<compile_context>
chip_gen: v7x
topology: tpu7x:2x2x1
jax: 0.10.0
libtpu: 0.0.40
codegen_flags: <defaults>
</compile_context>

<pallas_src>
import functools

import jax
import jax.numpy as jnp
from jax.experimental import pallas as pl
from jax.experimental.pallas import tpu as pltpu


# --------------------------------------------------------------------------
# Fused kernel: one grid step == one batch element.
# --------------------------------------------------------------------------
def _attention_kernel(x_ref, w_ref, o_ref, *, inv_hw):
    # x_ref: (1, C, HW) f32 activation block (lane axis = HW, lane-dense).
    # w_ref: (C, C_red) bf16 fc weight, pre-transposed from PyTorch (C_red, C);
    #        its block index never changes -> resident in VMEM across the grid.
    # o_ref: (1, C, HW) f32 output block.
    x = x_ref[...]

    # AdaptiveAvgPool2d((1,1)): global mean over the spatial (lane) axis, f32.
    pooled = jnp.sum(x, axis=-1) * inv_hw                       # (1, C) f32

    # Linear(no bias): bf16 operands on the MXU, f32 accumulation.
    logits = jnp.dot(pooled.astype(jnp.bfloat16), w_ref[...],
                     preferred_element_type=jnp.float32)        # (1, C_red) f32

    # Softmax over the channel axis, f32.
    logits = logits - jnp.max(logits, axis=-1, keepdims=True)
    e = jnp.exp(logits)
    attn = e / jnp.sum(e, axis=-1, keepdims=True)               # (1, C_red) f32

    # Channel-wise rescale of the full activation (lane-dense store).
    o_ref[...] = x * attn[:, :, None]


# --------------------------------------------------------------------------
# Wrapper
# --------------------------------------------------------------------------
def attention_layer(x_nchw, fc_weight):
    """AttentionLayer.forward.

    x_nchw:    (B, C, H, W) float32, NCHW (PyTorch convention).
    fc_weight: (C_red, C) float32, PyTorch nn.Linear weight layout.
    """
    B, C, H, W = x_nchw.shape
    C_red = fc_weight.shape[0]
    assert fc_weight.shape[1] == C
    # The PyTorch module's `x * y.view(b, -1, 1, 1)` only broadcasts when
    # reduced_channels == num_channels (which is how the U-Net uses it).
    assert C_red == C, "x * y broadcast requires reduced_channels == num_channels"

    hw = H * W
    # Fold spatial into the lane axis: contiguous NCHW -> (B, C, H*W) is a
    # free reshape.  H*W = 256 here is a multiple of 128 -> unmasked stores;
    # if it were not, the block still spans the full array dims so it remains
    # legal (just masked on the last partial vreg).
    x2 = x_nchw.reshape(B, C, hw)
    w_t = jnp.transpose(fc_weight).astype(jnp.bfloat16)         # (C, C_red)

    kernel = functools.partial(_attention_kernel, inv_hw=1.0 / float(hw))
    out = pl.pallas_call(
        kernel,
        out_shape=jax.ShapeDtypeStruct((B, C, hw), jnp.float32),
        grid_spec=pltpu.PrefetchScalarGridSpec(
            num_scalar_prefetch=0,
            grid=(B,),
            in_specs=[
                pl.BlockSpec((1, C, hw), lambda b: (b, 0, 0)),   # activation
                pl.BlockSpec((C, C_red), lambda b: (0, 0)),      # fc weight
            ],
            out_specs=pl.BlockSpec((1, C, hw), lambda b: (b, 0, 0)),
        ),
        compiler_params=pltpu.CompilerParams(
            dimension_semantics=("parallel",)),                  # v7x: 2 TCs
    )(x2, w_t)
    return out.reshape(B, C, H, W)


# --------------------------------------------------------------------------
# Pure-JAX reference (mirrors the PyTorch forward) for a correctness check.
# --------------------------------------------------------------------------
def attention_layer_ref(x, fc_weight):
    y = jnp.mean(x, axis=(2, 3))                    # (B, C)
    y = y @ fc_weight.T                             # (B, C_red)
    y = jax.nn.softmax(y, axis=1)
    return x * y[:, :, None, None]


if __name__ == "__main__":
    key = jax.random.PRNGKey(0)
    k_x, k_w = jax.random.split(key)

    B, C, H, W = 2, 4, 16, 16
    C_RED = C

    x = jax.random.normal(k_x, (B, C, H, W), jnp.float32)
    fc_w = jax.random.normal(k_w, (C_RED, C), jnp.float32) / jnp.sqrt(jnp.float32(C))

    fwd = jax.jit(attention_layer)
    out = jax.block_until_ready(fwd(x, fc_w))

    assert out.shape == (B, C, H, W), out.shape
    assert bool(jnp.all(jnp.isfinite(out)))

    ref = attention_layer_ref(x, fc_w)
    max_err = float(jnp.max(jnp.abs(out - ref)))
    # bf16 operands on the (tiny) fc matmul; pool/softmax/scale are f32.
    assert max_err < 2e-2, f"max abs error {max_err}"

    print("KERNEL_OK")
</pallas_src>

<mosaic_0001>
module attributes {stable_mosaic.version = 11 : i64} {
  func.func @_attention_kernel(%arg0: i32, %arg1: memref<1x4x256xf32, #tpu.memory_space<vmem>>, %arg2: memref<4x4xbf16, #tpu.memory_space<vmem>>, %arg3: memref<1x4x256xf32, #tpu.memory_space<vmem>>) attributes {dimension_semantics = [#tpu.dimension_semantics<parallel>], iteration_bounds = array<i64: 2>, scalar_prefetch = 0 : i64, scratch_operands = 0 : i64, tpu.core_type = #tpu.core_type<tc>, window_params = [{transform_indices = @transform_0, window_bounds = array<i64: 1, 4, 256>}, {pipeline_mode = #tpu.pipeline_mode<synchronous>, transform_indices = @transform_1, window_bounds = array<i64: 4, 4>}, {transform_indices = @transform_2, window_bounds = array<i64: 1, 4, 256>}]} {
    %c0 = arith.constant 0 : index
    %c0_0 = arith.constant 0 : index
    %c0_1 = arith.constant 0 : index
    %0 = vector.load %arg1[%c0, %c0_0, %c0_1] : memref<1x4x256xf32, #tpu.memory_space<vmem>>, vector<1x4x256xf32>
    %cst = arith.constant dense<0.000000e+00> : vector<1x4xf32>
    %1 = vector.multi_reduction <add>, %0, %cst [2] : vector<1x4x256xf32> to vector<1x4xf32>
    %cst_2 = arith.constant 3.906250e-03 : f32
    %2 = vector.broadcast %cst_2 : f32 to vector<1x4xf32>
    %3 = arith.mulf %1, %2 : vector<1x4xf32>
    %4 = arith.truncf %3 : vector<1x4xf32> to vector<1x4xbf16>
    %c0_3 = arith.constant 0 : index
    %c0_4 = arith.constant 0 : index
    %5 = vector.load %arg2[%c0_3, %c0_4] : memref<4x4xbf16, #tpu.memory_space<vmem>>, vector<4x4xbf16>
    %cst_5 = arith.constant dense<0.000000e+00> : vector<1x4xf32>
    %6 = tpu.matmul %4, %5, %cst_5 {dimension_numbers = #tpu.dot_dimension_numbers<[1], [0], [0], [1], [0, 0, 1, 1], [], []>} : vector<1x4xbf16>, vector<4x4xbf16>, vector<1x4xf32> -> vector<1x4xf32>
    %cst_6 = arith.constant dense<0xFF800000> : vector<1xf32>
    %7 = vector.multi_reduction <maximumf>, %6, %cst_6 [1] : vector<1x4xf32> to vector<1xf32>
    %8 = vector.shape_cast %7 : vector<1xf32> to vector<1x1xf32>
    %9 = vector.broadcast %8 : vector<1x1xf32> to vector<1x4xf32>
    %10 = arith.subf %6, %9 : vector<1x4xf32>
    %11 = math.exp %10 : vector<1x4xf32>
    %cst_7 = arith.constant dense<0.000000e+00> : vector<1xf32>
    %12 = vector.multi_reduction <add>, %11, %cst_7 [1] : vector<1x4xf32> to vector<1xf32>
    %13 = vector.shape_cast %12 : vector<1xf32> to vector<1x1xf32>
    %14 = vector.broadcast %13 : vector<1x1xf32> to vector<1x4xf32>
    %15 = arith.divf %11, %14 : vector<1x4xf32>
    %16 = vector.shape_cast %15 : vector<1x4xf32> to vector<1x4x1xf32>
    %17 = vector.broadcast %16 : vector<1x4x1xf32> to vector<1x4x256xf32>
    %18 = arith.mulf %0, %17 : vector<1x4x256xf32>
    %c0_8 = arith.constant 0 : index
    %c0_9 = arith.constant 0 : index
    %c0_10 = arith.constant 0 : index
    %19 = vector.load %arg3[%c0_8, %c0_9, %c0_10] : memref<1x4x256xf32, #tpu.memory_space<vmem>>, vector<1x4x256xf32>
    tpu.vector_store %arg3[%c0_8, %c0_9, %c0_10], %18 {strides = array<i32>} : memref<1x4x256xf32, #tpu.memory_space<vmem>>, vector<1x4x256xf32>,
    return
  }
  func.func @transform_0(%arg0: i32) -> (i32, i32, i32) {
    %c0_i32 = arith.constant 0 : i32
    %c0_i32_0 = arith.constant 0 : i32
    %c0_i32_1 = arith.constant 0 : i32
    return %arg0, %c0_i32, %c0_i32_0 : i32, i32, i32
  }
  func.func @transform_1(%arg0: i32) -> (i32, i32) {
    %c0_i32 = arith.constant 0 : i32
    %c0_i32_0 = arith.constant 0 : i32
    %c0_i32_1 = arith.constant 0 : i32
    return %c0_i32, %c0_i32_0 : i32, i32
  }
  func.func @transform_2(%arg0: i32) -> (i32, i32, i32) {
    %c0_i32 = arith.constant 0 : i32
    %c0_i32_0 = arith.constant 0 : i32
    %c0_i32_1 = arith.constant 0 : i32
    return %arg0, %c0_i32, %c0_i32_0 : i32, i32, i32
  }
}

</mosaic_0001>

<bundles_post_ra>
// kernel: attention_layer.1
= control target key start
LH: loop header
LB: loop body
LE: loop exit
PB: predicated region body
PF: predicated region fallthrough
CT: control target
= control target key end

     0   :  { %s364_s9 = smov 0   ;;  %s391_s0 = inlined_call_operand.vmem [shape: f32[2,4,256], index: 0, kind: input, shape index: {}]   ;;  %s392_s1 = inlined_call_operand.vmem [shape: bf16[4,4], index: 1, kind: input, shape index: {}]   ;;  %s393_s2 = inlined_call_operand.vmem [shape: f32[2,4,256], index: 2, kind: output, shape index: {}]  }
   0x1 LB: > { %s300_s10 = sadd.s32 4294967295, %s344_s9   ;;  %p304_p0 = scmp.ge.s32.totalorder %s344_s9, 1  ;;  %s344_s9 = sphi %s364_s9, %s12_s9  }
   0x2   : > { %p112_p1 = scmp.lt.s32.totalorder %s344_s9, 3 }
   0x4   : > { %p113_p2 = pnand %p304_p0, %p112_p1 }
   0x5   : > { %p134_p3 = scmp.lt.s32.totalorder (!%p113_p2), %s300_s10, 1  ;;  %vm149_vm0 = vcmask (!%p113_p2), 1043456   ;;  %v157_v5 = vld [vmem:[%s392_s1] sm:$0x3] (!%p113_p2)  ;;  %vm171_vm1 = vcmask (!%p113_p2), 1041408   ;;  %v346_v6 = vmov (!%p113_p2), 0.0   ;;  %v160_v8 = vlaneseq (!%p113_p2) }
   0x6   : > { %116 = sbr.rel (%p113_p2) target bundleno = 822 (0x336), region = 28  ;;  %316 = vmatprep.subr.bf16.mxu0 (!%p113_p2), %v346_v6  ;;  %v173_v7 = vsel (!%p113_p2), %vm171_vm1, %v157_v5, 0  ;;  %vm347_vm2 = vmmov (!%p113_p2), 0   ;;  %vm167_vm3 = vcmask (!%p113_p2), 31744   ;;  %vm215_vm4 = vcmask (!%p113_p2), 24576  }
   0x7   : > { %317 = vmatpush3.bf16.msra.mxu0 (!%p113_p2), %v173_v7  ;;  %318 = vmatprep.mubr.msk.bf16.mxu0 (!%p113_p2), %vm347_vm2, %v346_v6  ;;  %v161_v9 = vand.u32 (!%p113_p2), 127, %v160_v8  ;;  %v163_v10 = vshrl.u32 (!%p113_p2), %v160_v8, 7  ;;  %v348_v33 = vmov (!%p113_p2), 839922192  }
   0x8   : > { %v236_v34 = vunpack.c.l.s4 (!%p113_p2), %v348_v33 }
   0x9   : > { %v164_v13 = vsub.s32 (!%p113_p2), %v161_v9, %v163_v10  ;;  %v229_v29 = vsub.s32 (!%p113_p2), 0, %v163_v10 }
   0xa   : > { %v237_v35 = vunpack.c.0.s8 (!%p113_p2), %v236_v34 }
   0xc   : > { %v240_v36 = vsub.s32 (!%p113_p2), %v237_v35, %v163_v10 }
   0xd   : > { %s395_s10 = smov (!%p134_p3, %s300_s10), 1 }
   0xe   : > { %s312_s11 = sshll.u32 %s395_s10, 3 }
   0xf   : > { %s138_s14 = scalar_lea.vmem %s391_s0, %s312_s11  ;;  %s143_s19 = scalar_lea.vmem %s393_s2, %s312_s11 }
  0x10   : > { %v145_v0 = vld [vmem:[%s138_s14] sm:$0xff] }
  0x11   : > { %v147_v1 = vcombine.high %v145_v0, %v145_v0  ;;  %v150_v2 = vsel %vm149_vm0, %v145_v0, 0.0 }
  0x13   : > { %v151_v3 = vsel %vm149_vm0, %v147_v1, 0.0 }
  0x14   : > { %v152_v4 = vadd.f32 %v151_v3, %v150_v2 }
  0x16   : > { %153 = vadd.xlane.f32.xlu0 %v152_v4 }
  0xa3   : > { %v154_v11 = vpop.xlane.xlu0 %153 }
  0xa4   : > { %v155_v12 = vmul.f32 0.00390625, %v154_v11 }
  0xa6   : > { %v156_v14 = vpack.c.bf16 %v155_v12, %v155_v12 }
  0xa8   : > { %v159_v15 = vunpack.c.l.b16 %v156_v14 }
  0xaa   : > { %v165_v16 = vrot.slane %v159_v15, %v164_v13 }
  0xac   : > { %v166_v17 = vpack.c.b16 %v165_v16, %v165_v16 }
  0xae   : > { %319 = vmatmul.mubr.msk.bf16.vlgmr.msra.gmra.mrb[0].mxu0 %vm167_vm3, %v166_v17 }
 0x181   : > { %v209_v18 = vpop.f32.mrb[0].mxu0 }
 0x182   : > { %v320_v19 = vpop.f32.mrb[1].mxu0  ;;  %v216_v20 = vsel %vm215_vm4, %v209_v18, -inf }
 0x183   : > { %217 = vmax.xlane.f32.xlu0 %v216_v20  ;;  %v212_v21 = vpop.f32.mrb[2].mxu0 }
 0x184   : > { %v321_v22 = vpop.f32.mrb[3].mxu0 }
 0x210   : > { %v218_v23 = vpop.xlane.xlu0 %217 }
 0x211   : > { %v219_v24 = vsub.f32 %v209_v18, %v218_v23 }
 0x213   : > { %v220_v25 = vmul.f32 1.442695, %v219_v24 }
 0x215   : > { %334 = vpow2.f32 %v220_v25 }
 0x21f   : > { %v335_v26 = vpop.eup %334 }
 0x220   : > { %v222_v27 = vsel %vm215_vm4, %v335_v26, 0.0 }
 0x221   : > { %223 = vadd.xlane.f32.xlu1 %v222_v27 }
 0x2ae   : > { %v224_v28 = vpop.xlane.xlu1 %223 }
 0x2af   : > { %336 = vrcp.f32 %v224_v28 }
 0x2b9   : > { %v337_v30 = vpop.eup %336 }
 0x2ba   : > { %v226_v31 = vmul.f32 %v337_v30, %v335_v26 }
 0x2bc   : > { %v230_v32 = vrot.slane %v226_v31, %v229_v29 }
 0x2be   : > { %232 = vbcast.lane.b32.xlu1 %v230_v32, 256 }
 0x330   : > { %v233_v37 = vpop.permute.xlu1 %232 }
 0x331   : > { %v241_v38 = vrot.slane %v233_v37, %v240_v36 }
 0x333   : > { %v243_v39 = vmul.f32 %v241_v38, %v145_v0 }
 0x335   : > { %244 = vst [vmem:[%s143_s19] sm:$0xff] %v243_v39 }
 0x336 PF: > { %s12_s9 = sadd.s32 1, %s344_s9  }
 0x337   : > { %p9_p4 = scmp.ge.s32.totalorder %s12_s9, 4  }
 0x339   :  { %11 = sbr.rel (!%p9_p4) target bundleno = 1 (0x1), region = 58 }

</bundles_post_ra>
